<compile_context>
chip_gen: v7x
topology: tpu7x:2x2x1
jax: 0.10.0
libtpu: 0.0.40
codegen_flags: <defaults>
</compile_context>

<pallas_src>
import math
import functools

import jax
import jax.numpy as jnp
import numpy as np
from jax.experimental import pallas as pl
from jax.experimental.pallas import tpu as pltpu


def self_attention_kernel(x_ref, gm_ref, gamma_ref, beta_ref,
                          wq_ref, bq_ref, wk_ref, bk_ref, wv_ref, bv_ref,
                          wout_ref, bout_ref, o_ref,
                          *, n_head, head_dim, eps, cpg, q_chunk):
    S, C = x_ref.shape[-2], x_ref.shape[-1]
    x = x_ref[0].astype(jnp.float32)                          # (S, C)

    # --- GroupNorm, rewritten as one affine pass: norm = x*a + b ---
    colsum = jnp.sum(x, axis=0, keepdims=True)                # (1, C)
    colsumsq = jnp.sum(x * x, axis=0, keepdims=True)          # (1, C)
    if cpg == 1:
        # num_groups == C: group mean is just the per-channel mean.
        inv_s = 1.0 / float(S)
        mean = colsum * inv_s
        meansq = colsumsq * inv_s
    else:
        # gm[i, j] = 1/(cpg*S) if channels i, j share a group. One stacked
        # (2, C) @ (C, C) GEMM gives both per-channel group means.
        stats = jnp.concatenate([colsum, colsumsq], axis=0)   # (2, C)
        g = jnp.dot(stats, gm_ref[...], preferred_element_type=jnp.float32)
        mean, meansq = g[0:1, :], g[1:2, :]
    var = jnp.maximum(meansq - mean * mean, 0.0)              # clamp cancellation
    a = gamma_ref[...] * jax.lax.rsqrt(var + eps)             # (1, C)
    b = beta_ref[...] - mean * a                              # (1, C)
    norm = (x * a + b).astype(jnp.bfloat16)                   # bf16 MXU operand

    # --- 1x1 qkv conv as three separate (S,C)@(C,C) matmuls (no in-kernel
    #     lane slicing of a fused (S,3C) result). Softmax scale is already
    #     folded into the Q weight/bias.
    q = jnp.dot(norm, wq_ref[...],
                preferred_element_type=jnp.float32) + bq_ref[...]       # (S, C) f32
    k_bf = (jnp.dot(norm, wk_ref[...],
                    preferred_element_type=jnp.float32)
            + bk_ref[...]).astype(jnp.bfloat16)                          # (S, C)
    v_bf = (jnp.dot(norm, wv_ref[...],
                    preferred_element_type=jnp.float32)
            + bv_ref[...]).astype(jnp.bfloat16)                          # (S, C)

    hd = head_dim
    n_chunks = S // q_chunk
    wout = wout_ref[...]                                      # (C, C) bf16
    bout = bout_ref[...]                                      # (1, C) f32

    for ci in range(n_chunks):                                # static query tiling
        r0 = ci * q_chunk
        q_c = q[r0:r0 + q_chunk, :].astype(jnp.bfloat16)      # (tq, C)
        outs = []
        for h in range(n_head):                               # contiguous head slices
            sl = slice(h * hd, (h + 1) * hd)
            s = jnp.einsum("qd,kd->qk", q_c[:, sl], k_bf[:, sl],
                           preferred_element_type=jnp.float32)      # (tq, S) f32
            m = jnp.max(s, axis=-1, keepdims=True)
            p = jnp.exp(s - m)                                      # f32 EUP
            l = jnp.sum(p, axis=-1, keepdims=True)                  # (tq, 1)
            o_h = jnp.dot(p.astype(jnp.bfloat16), v_bf[:, sl],
                          preferred_element_type=jnp.float32)       # (tq, hd)
            # deferred softmax normalization: O(tq*hd) instead of O(tq*S)
            outs.append(o_h * pl.reciprocal(l, approx=True))
        attn_c = outs[0] if n_head == 1 else jnp.concatenate(outs, axis=-1)

        # --- 1x1 out conv + residual (residual uses the original input) ---
        y = jnp.dot(attn_c.astype(jnp.bfloat16), wout,
                    preferred_element_type=jnp.float32) + bout        # (tq, C)
        o_ref[0, r0:r0 + q_chunk, :] = (y + x[r0:r0 + q_chunk, :]).astype(o_ref.dtype)


def self_attention(x_nchw, params, *, n_head, head_dim, num_groups,
                   eps=1e-5, q_block=256):
    B, C, H, W = x_nchw.shape
    S = H * W
    x = jnp.transpose(x_nchw, (0, 2, 3, 1)).reshape(B, S, C)

    cpg = C // num_groups
    grp = np.arange(C) // max(cpg, 1)
    gm = jnp.asarray((grp[:, None] == grp[None, :]).astype(np.float32)
                     / float(max(cpg, 1) * S))

    gamma = params["gn_weight"].reshape(1, C).astype(jnp.float32)
    beta = params["gn_bias"].reshape(1, C).astype(jnp.float32)

    # --- qkv weight prep (one-time): the PyTorch conv output channels are
    # per-head interleaved [q_h | k_h | v_h]; pull out head-major Q / K / V
    # row blocks and fold 1/sqrt(head_dim) into the Q rows/bias.
    hd = head_dim
    q_rows = (np.arange(n_head)[:, None] * 3 * hd
              + np.arange(hd)[None, :]).reshape(-1)
    k_rows = q_rows + hd
    v_rows = q_rows + 2 * hd

    w_all = params["qkv_weight"].reshape(3 * C, C)            # (3C, C)
    b_all = params["qkv_bias"].reshape(3 * C)
    scale = 1.0 / math.sqrt(hd)

    wq = (w_all[q_rows] * scale).T.astype(jnp.bfloat16)       # (C, C)
    bq = (b_all[q_rows] * scale).reshape(1, C).astype(jnp.float32)
    wk = w_all[k_rows].T.astype(jnp.bfloat16)
    bk = b_all[k_rows].reshape(1, C).astype(jnp.float32)
    wv = w_all[v_rows].T.astype(jnp.bfloat16)
    bv = b_all[v_rows].reshape(1, C).astype(jnp.float32)

    wout = params["out_weight"].reshape(C, C).T.astype(jnp.bfloat16)   # (C, C)
    bout = params["out_bias"].reshape(1, C).astype(jnp.float32)

    # --- query tile size: largest divisor of S that is <= q_block ---
    tq = min(S, q_block)
    while tq > 1 and S % tq:
        tq -= 1
    if tq < 8:
        tq = S

    kernel = functools.partial(self_attention_kernel, n_head=n_head,
                               head_dim=head_dim, eps=eps, cpg=cpg, q_chunk=tq)

    # --- VMEM budget (per grid step), with margin; capped at 64 MiB (v7x) ---
    vmem_bytes = (
        4 * S * C * 4                    # x + out blocks, double-buffered, f32
        + S * C * (2 + 4 + 2 + 2)        # norm bf16, q f32, k bf16, v bf16
        + tq * S * (4 + 2)               # score block f32 + probs bf16
        + 4 * tq * C * 4                 # per-chunk temporaries
        + 4 * C * C * 2 + C * C * 4      # wq/wk/wv/wout bf16 + gm f32
        + 16 * C * 4                     # biases / gamma / beta
    )
    vmem_limit = int(min(max(2 * vmem_bytes + (1 << 20), 32 << 20), 64 << 20))

    flops = 2 * B * (4 * S * C * C + 2 * S * S * C)
    cost = pl.CostEstimate(
        flops=flops,
        transcendentals=B * n_head * S * S,
        bytes_accessed=2 * B * S * C * 4
        + 4 * C * C * 2 + C * C * 4 + 16 * C * 4)

    out = pl.pallas_call(
        kernel,
        out_shape=jax.ShapeDtypeStruct((B, S, C), x.dtype),
        grid=(B,),
        in_specs=[
            pl.BlockSpec((1, S, C), lambda b: (b, 0, 0)),     # x (per-batch tile)
            pl.BlockSpec((C, C), lambda b: (0, 0)),           # group-mixing matrix
            pl.BlockSpec((1, C), lambda b: (0, 0)),           # gn weight
            pl.BlockSpec((1, C), lambda b: (0, 0)),           # gn bias
            pl.BlockSpec((C, C), lambda b: (0, 0)),           # Wq (scaled, bf16)
            pl.BlockSpec((1, C), lambda b: (0, 0)),           # bq (scaled)
            pl.BlockSpec((C, C), lambda b: (0, 0)),           # Wk
            pl.BlockSpec((1, C), lambda b: (0, 0)),           # bk
            pl.BlockSpec((C, C), lambda b: (0, 0)),           # Wv
            pl.BlockSpec((1, C), lambda b: (0, 0)),           # bv
            pl.BlockSpec((C, C), lambda b: (0, 0)),           # Wout (bf16)
            pl.BlockSpec((1, C), lambda b: (0, 0)),           # bout
        ],
        out_specs=pl.BlockSpec((1, S, C), lambda b: (b, 0, 0)),
        input_output_aliases={0: 0},                          # out reuses x buffer
        compiler_params=pltpu.CompilerParams(
            dimension_semantics=("parallel",),
            vmem_limit_bytes=vmem_limit),
        cost_estimate=cost,
    )(x, gm, gamma, beta, wq, bq, wk, bk, wv, bv, wout, bout)

    return out.reshape(B, H, W, C).transpose(0, 3, 1, 2)


def _variance_scaling_uniform(key, shape, fan_in, fan_out, scale=1.0):
    s = scale / ((fan_in + fan_out) / 2.0)
    bound = math.sqrt(3.0 * s)
    return jax.random.uniform(key, shape, jnp.float32, -bound, bound)


def init_params(key, in_channel):
    C = in_channel
    k1, k2 = jax.random.split(key)
    return {
        "gn_weight": jnp.ones((C,), jnp.float32),
        "gn_bias": jnp.zeros((C,), jnp.float32),
        # conv2d(C, 3C, 1): weight (3C, C, 1, 1) stored flat as (3C, C)
        "qkv_weight": _variance_scaling_uniform(k1, (3 * C, C), C, 3 * C, scale=1.0),
        "qkv_bias": jnp.zeros((3 * C,), jnp.float32),
        # conv2d(C, C, 1, scale=1e-10)
        "out_weight": _variance_scaling_uniform(k2, (C, C), C, C, scale=1e-10),
        "out_bias": jnp.zeros((C,), jnp.float32),
    }


def reference(x, params, *, n_head, head_dim, num_groups, eps=1e-5):
    """Pure-JAX replica of the PyTorch forward, for a sanity check."""
    B, C, H, W = x.shape
    cpg = C // num_groups
    xr = x.reshape(B, num_groups, cpg, H, W)
    mean = xr.mean(axis=(2, 3, 4), keepdims=True)
    var = xr.var(axis=(2, 3, 4), keepdims=True)
    norm = ((xr - mean) / jnp.sqrt(var + eps)).reshape(B, C, H, W)
    norm = norm * params["gn_weight"][None, :, None, None] \
        + params["gn_bias"][None, :, None, None]
    qkv = jnp.einsum("oc,bchw->bohw", params["qkv_weight"], norm) \
        + params["qkv_bias"][None, :, None, None]
    qkv = qkv.reshape(B, n_head, head_dim * 3, H, W)
    q, k, v = jnp.split(qkv, 3, axis=2)
    attn = jnp.einsum("bnchw,bncyx->bnhwyx", q, k) / math.sqrt(head_dim)
    attn = jax.nn.softmax(attn.reshape(B, n_head, H, W, -1), axis=-1)
    attn = attn.reshape(B, n_head, H, W, H, W)
    out = jnp.einsum("bnhwyx,bncyx->bnchw", attn, v).reshape(B, C, H, W)
    out = jnp.einsum("oc,bchw->bohw", params["out_weight"], out) \
        + params["out_bias"][None, :, None, None]
    return out + x


if __name__ == "__main__":
    B, C, H, W = 2, 32, 8, 8          # in_channel=32 so default group_norm=32 divides

    key = jax.random.PRNGKey(0)
    kx, kp, kw = jax.random.split(key, 3)
    x = jax.random.normal(kx, (B, C, H, W), jnp.float32)
    params = init_params(kp, C)

    # Check 1: faithful module init (out-conv scale 1e-10), n_head=1, groups=32.
    out = self_attention(x, params, n_head=1, head_dim=C, num_groups=32)
    out = jax.block_until_ready(out)
    ref = reference(x, params, n_head=1, head_dim=C, num_groups=32)
    np.testing.assert_allclose(np.asarray(out), np.asarray(ref),
                               rtol=1e-3, atol=1e-3)

    # Check 2: non-degenerate out conv so the attention path is actually
    # exercised numerically (bf16-MXU tolerance).
    params2 = dict(params)
    params2["out_weight"] = _variance_scaling_uniform(kw, (C, C), C, C, scale=1.0)
    out2 = jax.block_until_ready(
        self_attention(x, params2, n_head=1, head_dim=C, num_groups=32))
    ref2 = reference(x, params2, n_head=1, head_dim=C, num_groups=32)
    np.testing.assert_allclose(np.asarray(out2), np.asarray(ref2),
                               rtol=5e-2, atol=5e-2)

    # Check 3: multi-head (n_head=4) + grouped GroupNorm (8 groups, cpg=4)
    # exercises the group-mixing GEMM and per-head slicing/concat paths.
    out3 = jax.block_until_ready(
        self_attention(x, params2, n_head=4, head_dim=C // 4, num_groups=8))
    ref3 = reference(x, params2, n_head=4, head_dim=C // 4, num_groups=8)
    np.testing.assert_allclose(np.asarray(out3), np.asarray(ref3),
                               rtol=5e-2, atol=5e-2)

    print("KERNEL_OK")
</pallas_src>

<mosaic_0001>
module attributes {stable_mosaic.version = 11 : i64} {
  func.func @self_attention_kernel(%arg0: i32, %arg1: memref<1x64x32xf32, #tpu.memory_space<vmem>>, %arg2: memref<32x32xf32, #tpu.memory_space<vmem>>, %arg3: memref<1x32xf32, #tpu.memory_space<vmem>>, %arg4: memref<1x32xf32, #tpu.memory_space<vmem>>, %arg5: memref<32x32xbf16, #tpu.memory_space<vmem>>, %arg6: memref<1x32xf32, #tpu.memory_space<vmem>>, %arg7: memref<32x32xbf16, #tpu.memory_space<vmem>>, %arg8: memref<1x32xf32, #tpu.memory_space<vmem>>, %arg9: memref<32x32xbf16, #tpu.memory_space<vmem>>, %arg10: memref<1x32xf32, #tpu.memory_space<vmem>>, %arg11: memref<32x32xbf16, #tpu.memory_space<vmem>>, %arg12: memref<1x32xf32, #tpu.memory_space<vmem>>, %arg13: memref<1x64x32xf32, #tpu.memory_space<vmem>>) attributes {dimension_semantics = [#tpu.dimension_semantics<parallel>], iteration_bounds = array<i64: 2>, scalar_prefetch = 0 : i64, scratch_operands = 0 : i64, tpu.core_type = #tpu.core_type<tc>, window_params = [{transform_indices = @transform_0, window_bounds = array<i64: 1, 64, 32>}, {pipeline_mode = #tpu.pipeline_mode<synchronous>, transform_indices = @transform_1, window_bounds = array<i64: 32, 32>}, {pipeline_mode = #tpu.pipeline_mode<synchronous>, transform_indices = @transform_2, window_bounds = array<i64: 1, 32>}, {pipeline_mode = #tpu.pipeline_mode<synchronous>, transform_indices = @transform_3, window_bounds = array<i64: 1, 32>}, {pipeline_mode = #tpu.pipeline_mode<synchronous>, transform_indices = @transform_4, window_bounds = array<i64: 32, 32>}, {pipeline_mode = #tpu.pipeline_mode<synchronous>, transform_indices = @transform_5, window_bounds = array<i64: 1, 32>}, {pipeline_mode = #tpu.pipeline_mode<synchronous>, transform_indices = @transform_6, window_bounds = array<i64: 32, 32>}, {pipeline_mode = #tpu.pipeline_mode<synchronous>, transform_indices = @transform_7, window_bounds = array<i64: 1, 32>}, {pipeline_mode = #tpu.pipeline_mode<synchronous>, transform_indices = @transform_8, window_bounds = array<i64: 32, 32>}, {pipeline_mode = #tpu.pipeline_mode<synchronous>, transform_indices = @transform_9, window_bounds = array<i64: 1, 32>}, {pipeline_mode = #tpu.pipeline_mode<synchronous>, transform_indices = @transform_10, window_bounds = array<i64: 32, 32>}, {pipeline_mode = #tpu.pipeline_mode<synchronous>, transform_indices = @transform_11, window_bounds = array<i64: 1, 32>}, {transform_indices = @transform_12, window_bounds = array<i64: 1, 64, 32>}]} {
    %c0 = arith.constant 0 : index
    %c0_0 = arith.constant 0 : index
    %c0_1 = arith.constant 0 : index
    %0 = vector.load %arg1[%c0, %c0_0, %c0_1] : memref<1x64x32xf32, #tpu.memory_space<vmem>>, vector<1x64x32xf32>
    %1 = vector.shape_cast %0 : vector<1x64x32xf32> to vector<64x32xf32>
    %cst = arith.constant dense<0.000000e+00> : vector<32xf32>
    %2 = vector.multi_reduction <add>, %1, %cst [0] : vector<64x32xf32> to vector<32xf32>
    %3 = vector.shape_cast %2 : vector<32xf32> to vector<1x32xf32>
    %4 = arith.mulf %1, %1 : vector<64x32xf32>
    %cst_2 = arith.constant dense<0.000000e+00> : vector<32xf32>
    %5 = vector.multi_reduction <add>, %4, %cst_2 [0] : vector<64x32xf32> to vector<32xf32>
    %6 = vector.shape_cast %5 : vector<32xf32> to vector<1x32xf32>
    %cst_3 = arith.constant 1.562500e-02 : f32
    %7 = vector.broadcast %cst_3 : f32 to vector<1x32xf32>
    %8 = arith.mulf %3, %7 : vector<1x32xf32>
    %cst_4 = arith.constant 1.562500e-02 : f32
    %9 = vector.broadcast %cst_4 : f32 to vector<1x32xf32>
    %10 = arith.mulf %6, %9 : vector<1x32xf32>
    %11 = arith.mulf %8, %8 : vector<1x32xf32>
    %12 = arith.subf %10, %11 : vector<1x32xf32>
    %cst_5 = arith.constant 0.000000e+00 : f32
    %13 = vector.broadcast %cst_5 : f32 to vector<1x32xf32>
    %14 = arith.maximumf %12, %13 : vector<1x32xf32>
    %c0_6 = arith.constant 0 : index
    %c0_7 = arith.constant 0 : index
    %15 = vector.load %arg3[%c0_6, %c0_7] : memref<1x32xf32, #tpu.memory_space<vmem>>, vector<1x32xf32>
    %cst_8 = arith.constant 9.99999974E-6 : f32
    %16 = vector.broadcast %cst_8 : f32 to vector<1x32xf32>
    %17 = arith.addf %14, %16 : vector<1x32xf32>
    %18 = math.rsqrt %17 : vector<1x32xf32>
    %19 = arith.mulf %15, %18 : vector<1x32xf32>
    %c0_9 = arith.constant 0 : index
    %c0_10 = arith.constant 0 : index
    %20 = vector.load %arg4[%c0_9, %c0_10] : memref<1x32xf32, #tpu.memory_space<vmem>>, vector<1x32xf32>
    %21 = arith.mulf %8, %19 : vector<1x32xf32>
    %22 = arith.subf %20, %21 : vector<1x32xf32>
    %23 = vector.broadcast %19 : vector<1x32xf32> to vector<64x32xf32>
    %24 = arith.mulf %1, %23 : vector<64x32xf32>
    %25 = vector.broadcast %22 : vector<1x32xf32> to vector<64x32xf32>
    %26 = arith.addf %24, %25 : vector<64x32xf32>
    %27 = arith.truncf %26 : vector<64x32xf32> to vector<64x32xbf16>
    %c0_11 = arith.constant 0 : index
    %c0_12 = arith.constant 0 : index
    %28 = vector.load %arg5[%c0_11, %c0_12] : memref<32x32xbf16, #tpu.memory_space<vmem>>, vector<32x32xbf16>
    %cst_13 = arith.constant dense<0.000000e+00> : vector<64x32xf32>
    %29 = tpu.matmul %27, %28, %cst_13 {dimension_numbers = #tpu.dot_dimension_numbers<[1], [0], [0], [1], [0, 0, 1, 1], [], []>} : vector<64x32xbf16>, vector<32x32xbf16>, vector<64x32xf32> -> vector<64x32xf32>
    %c0_14 = arith.constant 0 : index
    %c0_15 = arith.constant 0 : index
    %30 = vector.load %arg6[%c0_14, %c0_15] : memref<1x32xf32, #tpu.memory_space<vmem>>, vector<1x32xf32>
    %31 = vector.broadcast %30 : vector<1x32xf32> to vector<64x32xf32>
    %32 = arith.addf %29, %31 : vector<64x32xf32>
    %c0_16 = arith.constant 0 : index
    %c0_17 = arith.constant 0 : index
    %33 = vector.load %arg7[%c0_16, %c0_17] : memref<32x32xbf16, #tpu.memory_space<vmem>>, vector<32x32xbf16>
    %cst_18 = arith.constant dense<0.000000e+00> : vector<64x32xf32>
    %34 = tpu.matmul %27, %33, %cst_18 {dimension_numbers = #tpu.dot_dimension_numbers<[1], [0], [0], [1], [0, 0, 1, 1], [], []>} : vector<64x32xbf16>, vector<32x32xbf16>, vector<64x32xf32> -> vector<64x32xf32>
    %c0_19 = arith.constant 0 : index
    %c0_20 = arith.constant 0 : index
    %35 = vector.load %arg8[%c0_19, %c0_20] : memref<1x32xf32, #tpu.memory_space<vmem>>, vector<1x32xf32>
    %36 = vector.broadcast %35 : vector<1x32xf32> to vector<64x32xf32>
    %37 = arith.addf %34, %36 : vector<64x32xf32>
    %38 = arith.truncf %37 : vector<64x32xf32> to vector<64x32xbf16>
    %c0_21 = arith.constant 0 : index
    %c0_22 = arith.constant 0 : index
    %39 = vector.load %arg9[%c0_21, %c0_22] : memref<32x32xbf16, #tpu.memory_space<vmem>>, vector<32x32xbf16>
    %cst_23 = arith.constant dense<0.000000e+00> : vector<64x32xf32>
    %40 = tpu.matmul %27, %39, %cst_23 {dimension_numbers = #tpu.dot_dimension_numbers<[1], [0], [0], [1], [0, 0, 1, 1], [], []>} : vector<64x32xbf16>, vector<32x32xbf16>, vector<64x32xf32> -> vector<64x32xf32>
    %c0_24 = arith.constant 0 : index
    %c0_25 = arith.constant 0 : index
    %41 = vector.load %arg10[%c0_24, %c0_25] : memref<1x32xf32, #tpu.memory_space<vmem>>, vector<1x32xf32>
    %42 = vector.broadcast %41 : vector<1x32xf32> to vector<64x32xf32>
    %43 = arith.addf %40, %42 : vector<64x32xf32>
    %44 = arith.truncf %43 : vector<64x32xf32> to vector<64x32xbf16>
    %c0_26 = arith.constant 0 : index
    %c0_27 = arith.constant 0 : index
    %45 = vector.load %arg11[%c0_26, %c0_27] : memref<32x32xbf16, #tpu.memory_space<vmem>>, vector<32x32xbf16>
    %c0_28 = arith.constant 0 : index
    %c0_29 = arith.constant 0 : index
    %46 = vector.load %arg12[%c0_28, %c0_29] : memref<1x32xf32, #tpu.memory_space<vmem>>, vector<1x32xf32>
    %47 = arith.truncf %32 : vector<64x32xf32> to vector<64x32xbf16>
    "tpu.trace_start"() <{level = 10 : i32, message = "qd,kd->qk"}> : () -> ()
    %cst_30 = arith.constant dense<0.000000e+00> : vector<64x64xf32>
    %48 = tpu.matmul %47, %38, %cst_30 {dimension_numbers = #tpu.dot_dimension_numbers<[1], [1], [0], [0], [0, 0, 1, 0], [], []>} : vector<64x32xbf16>, vector<64x32xbf16>, vector<64x64xf32> -> vector<64x64xf32>
    "tpu.trace_stop"() : () -> ()
    %cst_31 = arith.constant dense<0xFF800000> : vector<64xf32>
    %49 = vector.multi_reduction <maximumf>, %48, %cst_31 [1] : vector<64x64xf32> to vector<64xf32>
    %50 = vector.shape_cast %49 : vector<64xf32> to vector<64x1xf32>
    %51 = vector.broadcast %50 : vector<64x1xf32> to vector<64x64xf32>
    %52 = arith.subf %48, %51 : vector<64x64xf32>
    %53 = math.exp %52 : vector<64x64xf32>
    %cst_32 = arith.constant dense<0.000000e+00> : vector<64xf32>
    %54 = vector.multi_reduction <add>, %53, %cst_32 [1] : vector<64x64xf32> to vector<64xf32>
    %55 = vector.shape_cast %54 : vector<64xf32> to vector<64x1xf32>
    %56 = arith.truncf %53 : vector<64x64xf32> to vector<64x64xbf16>
    %cst_33 = arith.constant dense<0.000000e+00> : vector<64x32xf32>
    %57 = tpu.matmul %56, %44, %cst_33 {dimension_numbers = #tpu.dot_dimension_numbers<[1], [0], [0], [1], [0, 0, 1, 1], [], []>} : vector<64x64xbf16>, vector<64x32xbf16>, vector<64x32xf32> -> vector<64x32xf32>
    %58 = tpu.reciprocal %55 {approx = true} : vector<64x1xf32> -> vector<64x1xf32>
    %59 = vector.broadcast %58 : vector<64x1xf32> to vector<64x32xf32>
    %60 = arith.mulf %57, %59 : vector<64x32xf32>
    %61 = arith.truncf %60 : vector<64x32xf32> to vector<64x32xbf16>
    %cst_34 = arith.constant dense<0.000000e+00> : vector<64x32xf32>
    %62 = tpu.matmul %61, %45, %cst_34 {dimension_numbers = #tpu.dot_dimension_numbers<[1], [0], [0], [1], [0, 0, 1, 1], [], []>} : vector<64x32xbf16>, vector<32x32xbf16>, vector<64x32xf32> -> vector<64x32xf32>
    %63 = vector.broadcast %46 : vector<1x32xf32> to vector<64x32xf32>
    %64 = arith.addf %62, %63 : vector<64x32xf32>
    %65 = arith.addf %64, %1 : vector<64x32xf32>
    %c0_35 = arith.constant 0 : index
    %c0_36 = arith.constant 0 : index
    %c0_37 = arith.constant 0 : index
    %66 = vector.load %arg13[%c0_35, %c0_36, %c0_37] : memref<1x64x32xf32, #tpu.memory_space<vmem>>, vector<1x64x32xf32>
    %67 = vector.shape_cast %66 : vector<1x64x32xf32> to vector<64x32xf32>
    %68 = vector.shape_cast %65 : vector<64x32xf32> to vector<1x64x32xf32>
    tpu.vector_store %arg13[%c0_35, %c0_36, %c0_37], %68 {strides = array<i32>} : memref<1x64x32xf32, #tpu.memory_space<vmem>>, vector<1x64x32xf32>,
    return
  }
  func.func @transform_0(%arg0: i32) -> (i32, i32, i32) {
    %c0_i32 = arith.constant 0 : i32
    %c0_i32_0 = arith.constant 0 : i32
    %c0_i32_1 = arith.constant 0 : i32
    return %arg0, %c0_i32, %c0_i32_0 : i32, i32, i32
  }
  func.func @transform_1(%arg0: i32) -> (i32, i32) {
    %c0_i32 = arith.constant 0 : i32
    %c0_i32_0 = arith.constant 0 : i32
    %c0_i32_1 = arith.constant 0 : i32
    return %c0_i32, %c0_i32_0 : i32, i32
  }
  func.func @transform_2(%arg0: i32) -> (i32, i32) {
    %c0_i32 = arith.constant 0 : i32
    %c0_i32_0 = arith.constant 0 : i32
    %c0_i32_1 = arith.constant 0 : i32
    return %c0_i32, %c0_i32_0 : i32, i32
  }
  func.func @transform_3(%arg0: i32) -> (i32, i32) {
    %c0_i32 = arith.constant 0 : i32
    %c0_i32_0 = arith.constant 0 : i32
    %c0_i32_1 = arith.constant 0 : i32
    return %c0_i32, %c0_i32_0 : i32, i32
  }
  func.func @transform_4(%arg0: i32) -> (i32, i32) {
    %c0_i32 = arith.constant 0 : i32
    %c0_i32_0 = arith.constant 0 : i32
    %c0_i32_1 = arith.constant 0 : i32
    return %c0_i32, %c0_i32_0 : i32, i32
  }
  func.func @transform_5(%arg0: i32) -> (i32, i32) {
    %c0_i32 = arith.constant 0 : i32
    %c0_i32_0 = arith.constant 0 : i32
    %c0_i32_1 = arith.constant 0 : i32
    return %c0_i32, %c0_i32_0 : i32, i32
  }
  func.func @transform_6(%arg0: i32) -> (i32, i32) {
    %c0_i32 = arith.constant 0 : i32
    %c0_i32_0 = arith.constant 0 : i32
    %c0_i32_1 = arith.constant 0 : i32
    return %c0_i32, %c0_i32_0 : i32, i32
  }
  func.func @transform_7(%arg0: i32) -> (i32, i32) {
    %c0_i32 = arith.constant 0 : i32
    %c0_i32_0 = arith.constant 0 : i32
    %c0_i32_1 = arith.constant 0 : i32
    return %c0_i32, %c0_i32_0 : i32, i32
  }
  func.func @transform_8(%arg0: i32) -> (i32, i32) {
    %c0_i32 = arith.constant 0 : i32
    %c0_i32_0 = arith.constant 0 : i32
    %c0_i32_1 = arith.constant 0 : i32
    return %c0_i32, %c0_i32_0 : i32, i32
  }
  func.func @transform_9(%arg0: i32) -> (i32, i32) {
    %c0_i32 = arith.constant 0 : i32
    %c0_i32_0 = arith.constant 0 : i32
    %c0_i32_1 = arith.constant 0 : i32
    return %c0_i32, %c0_i32_0 : i32, i32
  }
  func.func @transform_10(%arg0: i32) -> (i32, i32) {
    %c0_i32 = arith.constant 0 : i32
    %c0_i32_0 = arith.constant 0 : i32
    %c0_i32_1 = arith.constant 0 : i32
    return %c0_i32, %c0_i32_0 : i32, i32
  }
  func.func @transform_11(%arg0: i32) -> (i32, i32) {
    %c0_i32 = arith.constant 0 : i32
    %c0_i32_0 = arith.constant 0 : i32
    %c0_i32_1 = arith.constant 0 : i32
    return %c0_i32, %c0_i32_0 : i32, i32
  }
  func.func @transform_12(%arg0: i32) -> (i32, i32, i32) {
    %c0_i32 = arith.constant 0 : i32
    %c0_i32_0 = arith.constant 0 : i32
    %c0_i32_1 = arith.constant 0 : i32
    return %arg0, %c0_i32, %c0_i32_0 : i32, i32, i32
  }
}

</mosaic_0001>

<bundles_post_ra>
// kernel: tpu_custom_call.1
= control target key start
LH: loop header
LB: loop body
LE: loop exit
PB: predicated region body
PF: predicated region fallthrough
CT: control target
= control target key end

     0   :  { %s1540_s20 = smov 0   ;;  %s1748_s0 = inlined_call_operand.vmem [shape: f32[2,64,32], index: 0, kind: input, shape index: {}, may-alias: {0,12}]   ;;  %s1749_s1 = inlined_call_operand.vmem [shape: f32[32,32], index: 1, kind: input, shape index: {}]   ;;  %s1750_s2 = inlined_call_operand.vmem [shape: f32[1,32], index: 2, kind: input, shape index: {}]   ;;  %s1751_s3 = inlined_call_operand.vmem [shape: f32[1,32], index: 3, kind: input, shape index: {}]   ;;  %s1752_s4 = inlined_call_operand.vmem [shape: bf16[32,32], index: 4, kind: input, shape index: {}]   ;;  %s1753_s5 = inlined_call_operand.vmem [shape: f32[1,32], index: 5, kind: input, shape index: {}]   ;;  %s1754_s6 = inlined_call_operand.vmem [shape: bf16[32,32], index: 6, kind: input, shape index: {}]   ;;  %s1755_s7 = inlined_call_operand.vmem [shape: f32[1,32], index: 7, kind: input, shape index: {}]   ;;  %s1756_s8 = inlined_call_operand.vmem [shape: bf16[32,32], index: 8, kind: input, shape index: {}]   ;;  %s1757_s9 = inlined_call_operand.vmem [shape: f32[1,32], index: 9, kind: input, shape index: {}]   ;;  %s1758_s10 = inlined_call_operand.vmem [shape: bf16[32,32], index: 10, kind: input, shape index: {}]   ;;  %s1759_s11 = inlined_call_operand.vmem [shape: f32[1,32], index: 11, kind: input, shape index: {}]   ;;  %s1760_s12 = inlined_call_operand.vmem [shape: f32[2,64,32], index: 12, kind: output, shape index: {}, may-alias: {0,12}]  }
   0x1 LB: > { %s1240_s21 = sadd.s32 4294967295, %s1473_s20   ;;  %p1244_p0 = scmp.ge.s32.totalorder %s1473_s20, 1  ;;  %s1473_s20 = sphi %s1540_s20, %s22_s20  }
   0x2   : > { %p362_p1 = scmp.lt.s32.totalorder %s1473_s20, 3 }
   0x4   : > { %p363_p2 = pnand %p1244_p0, %p362_p1 }
   0x5   : > { %v1425_v0 = vld [vmem:[%s1752_s4] sm:$0xff] (!%p363_p2)   ;;  %p404_p3 = scmp.lt.s32.totalorder (!%p363_p2), %s1240_s21, 1  ;;  %v1426_v1 = vld [vmem:[%s1752_s4 + $0x8] sm:$0xff] (!%p363_p2)   ;;  %vm423_vm0 = vcmask (!%p363_p2), 261120   ;;  %vm900_vm1 = vcmask (!%p363_p2), 523264  }
   0x6   : > { %366 = sbr.rel (%p363_p2) target bundleno = 1165 (0x48d), region = 68  ;;  %1409 = vmatprep.subr.bf16.mxu1 (!%p363_p2), %v1425_v0  ;;  %1329 = vmatprep.subr.bf16.mxu0 (!%p363_p2), %v1425_v0  ;;  %v1560_v2 = vld [vmem:[%s1754_s6] sm:$0xff] (!%p363_p2)  }
   0x7   : > { %1411 = vmatpush3.bf16.msra.mxu1 (!%p363_p2), %v1425_v0  ;;  %1330 = vmatpush3.bf16.msra.mxu0 (!%p363_p2), %v1425_v0 }
   0x8   : > { %1410 = vmatprep.subr.bf16.mxu1 (!%p363_p2), %v1426_v1  ;;  %1331 = vmatprep.subr.bf16.mxu0 (!%p363_p2), %v1426_v1 }
   0xb   : > { %1412 = vmatpush3.bf16.msra.mxu1 (!%p363_p2), %v1426_v1  ;;  %1332 = vmatpush3.bf16.msra.mxu0 (!%p363_p2), %v1426_v1 }
   0xc   : > { %1341 = vmatprep.subr.bf16.mxu1 (!%p363_p2), %v1560_v2 }
   0xd   : > { %s1762_s21 = smov (!%p404_p3, %s1240_s21), 1 }
   0xe   : > { %s1287_s26 = sshll.u32 %s1762_s21, 6 }
   0xf   : > { %s1567_s30 = scalar_lea.vmem %s1748_s0, %s1287_s26  ;;  %s413_s23 = scalar_lea.vmem %s1760_s12, %s1287_s26 }
  0x10   : > { %v1570_v3 = vld [vmem:[%s1567_s30] sm:$0xff]  ;;  %v1573_v4 = vld [vmem:[%s1567_s30 + $0x8] sm:$0xff]  ;;  %v1576_v5 = vld [vmem:[%s1567_s30 + $0x10] sm:$0xff] }
  0x11   : > { %v1579_v6 = vld [vmem:[%s1567_s30 + $0x18] sm:$0xff]  ;;  %v1582_v7 = vld [vmem:[%s1567_s30 + $0x20] sm:$0xff]  ;;  %v424_v8 = vsel %vm423_vm0, %v1570_v3, 0.0  ;;  %v425_v9 = vsel %vm423_vm0, %v1573_v4, 0.0  ;;  %v427_v10 = vsel %vm423_vm0, %v1576_v5, 0.0  ;;  %v445_v11 = vmul.f32 %v1570_v3, %v1570_v3  ;;  %v1593_v12 = vld [vmem:[%s1567_s30 + $0x28] sm:$0xff] }
  0x12   : > { %v426_v13 = vadd.f32 %v425_v9, %v424_v8  ;;  %v429_v14 = vsel %vm423_vm0, %v1579_v6, 0.0  ;;  %v431_v15 = vsel %vm423_vm0, %v1582_v7, 0.0  ;;  %v446_v16 = vmul.f32 %v1573_v4, %v1573_v4  ;;  %v1611_v23 = vld [vmem:[%s1567_s30 + $0x30] sm:$0xff]  ;;  %v1620_v30 = vld [vmem:[%s1567_s30 + $0x38] sm:$0xff] }
  0x13   : > { %v447_v17 = vmul.f32 %v1576_v5, %v1576_v5  ;;  %v448_v19 = vmul.f32 %v1579_v6, %v1579_v6  ;;  %v449_v20 = vmul.f32 %v1582_v7, %v1582_v7  ;;  %v453_v21 = vsel %vm423_vm0, %v445_v11, 0.0  ;;  %v479_v11 = vld [vmem:[%s1750_s2] sm:$0x1] }
  0x14   : > { %v428_v18 = vadd.f32 %v427_v10, %v426_v13  ;;  %v454_v22 = vsel %vm423_vm0, %v446_v16, 0.0  ;;  %v433_v27 = vsel %vm423_vm0, %v1593_v12, 0.0  ;;  %v450_v28 = vmul.f32 %v1593_v12, %v1593_v12  ;;  %v483_v16 = vld [vmem:[%s1751_s3] sm:$0x1] }
  0x15   : > { %v455_v25 = vadd.f32 %v454_v22, %v453_v21  ;;  %v456_v26 = vsel %vm423_vm0, %v447_v17, 0.0  ;;  %v458_v29 = vsel %vm423_vm0, %v448_v19, 0.0  ;;  %v435_v33 = vsel %vm423_vm0, %v1611_v23, 0.0 }
  0x16   : > { %v430_v24 = vadd.f32 %v429_v14, %v428_v18  ;;  %v451_v34 = vmul.f32 %v1611_v23, %v1611_v23  ;;  %v460_v35 = vsel %vm423_vm0, %v449_v20, 0.0  ;;  %v437_v38 = vsel %vm423_vm0, %v1620_v30, 0.0 }
  0x17   : > { %v457_v32 = vadd.f32 %v456_v26, %v455_v25  ;;  %v452_v39 = vmul.f32 %v1620_v30, %v1620_v30  ;;  %v462_v40 = vsel %vm423_vm0, %v450_v28, 0.0  ;;  %v487_v9 = vlaneseq }
  0x18   : > { %v432_v31 = vadd.f32 %v431_v15, %v430_v24  ;;  %v464_v43 = vsel %vm423_vm0, %v451_v34, 0.0 }
  0x19   : > { %v459_v37 = vadd.f32 %v458_v29, %v457_v32  ;;  %v466_v46 = vsel %vm423_vm0, %v452_v39, 0.0  ;;  %v488_v10 = vshrl.u32 %v487_v9, 7 }
  0x1a   : > { %v434_v36 = vadd.f32 %v433_v27, %v432_v31 }
  0x1b   : > { %v461_v42 = vadd.f32 %v460_v35, %v459_v37  ;;  %v489_v13 = vsub.s32 0, %v488_v10 }
  0x1c   : > { %v436_v41 = vadd.f32 %v435_v33, %v434_v36 }
  0x1d   : > { %v463_v45 = vadd.f32 %v462_v40, %v461_v42 }
  0x1e   : > { %v438_v44 = vadd.f32 %v437_v38, %v436_v41  ;;  %v1428_v41 = vld [vmem:[%s1754_s6 + $0x8] sm:$0xff]  }
  0x1f   : > { %v465_v48 = vadd.f32 %v464_v43, %v463_v45  ;;  %v1249_v45 = vld [vmem:[%s1753_s5] ss:$0 sm:$0xff] }
  0x20   : > { %v439_v47 = vrot.slane %v438_v44, 4 }
  0x21   : > { %v467_v50 = vadd.f32 %v466_v46, %v465_v48 }
  0x22   : > { %v440_v49 = vadd.f32 %v439_v47, %v438_v44  ;;  %v1429_v44 = vld [vmem:[%s1756_s8] sm:$0xff]  }
  0x23   : > { %v468_v52 = vrot.slane %v467_v50, 4  ;;  %1353 = vmatprep.subr.bf16.mxu0 %v1429_v44 }
  0x24   : > { %v441_v51 = vrot.slane %v440_v49, 2 }
  0x25   : > { %v469_v54 = vadd.f32 %v468_v52, %v467_v50 }
  0x26   : > { %v442_v53 = vadd.f32 %v441_v51, %v440_v49 }
  0x27   : > { %v470_v56 = vrot.slane %v469_v54, 2 }
  0x28   : > { %v443_v55 = vrot.slane %v442_v53, 1 }
  0x29   : > { %v471_v58 = vadd.f32 %v470_v56, %v469_v54 }
  0x2a   : > { %v444_v57 = vadd.f32 %v443_v55, %v442_v53 }
  0x2b   : > { %v472_v59 = vrot.slane %v471_v58, 1 }
  0x2c   : > { %v474_v60 = vmul.f32 0.015625, %v444_v57 }
  0x2d   : > { %v473_v61 = vadd.f32 %v472_v59, %v471_v58 }
  0x2e   : > { %v476_v62 = vmul.f32 %v474_v60, %v474_v60 }
  0x2f   : > { %v475_v63 = vmul.f32 0.015625, %v473_v61 }
  0x31   : > { %v477_v0 = vsub.f32 %v475_v63, %v476_v62 }
  0x33   : > { %v478_v1 = vmax.f32 %v477_v0, 0.0 }
  0x35   : > { %v480_v8 = vadd.f32 1e-05, %v478_v1 }
  0x37   : > { %1433 = vrsqrt.f32 %v480_v8  ;;  %v1256_v8 = vld [vmem:[%s1755_s7] ss:$0 sm:$0xff] }
  0x41   : > { %v1434_v14 = vpop.eup %1433 }
  0x42   : > { %v482_v15 = vmul.f32 %v1434_v14, %v479_v11 }
  0x44   : > { %v484_v17 = vmul.f32 %v482_v15, %v474_v60  ;;  %v490_v18 = vrot.slane %v482_v15, %v489_v13 }
  0x46   : > { %v485_v19 = vsub.f32 %v483_v16, %v484_v17  ;;  %v496_v20 = vmul.f32 %v490_v18, %v1582_v7  ;;  %v497_v21 = vmul.f32 %v490_v18, %v1593_v12  ;;  %v498_v22 = vmul.f32 %v490_v18, %v1611_v23 }
  0x47   : > { %v499_v24 = vmul.f32 %v490_v18, %v1620_v30  ;;  %v492_v25 = vmul.f32 %v490_v18, %v1570_v3  ;;  %v493_v26 = vmul.f32 %v490_v18, %v1573_v4  ;;  %v494_v27 = vmul.f32 %v490_v18, %v1576_v5 }
  0x48   : > { %v504_v28 = vrot.slane %v485_v19, %v489_v13  ;;  %v495_v29 = vmul.f32 %v490_v18, %v1579_v6 }
  0x4a   : > { %v510_v31 = vadd.f32 %v504_v28, %v496_v20  ;;  %v511_v32 = vadd.f32 %v504_v28, %v497_v21  ;;  %v512_v33 = vadd.f32 %v504_v28, %v498_v22  ;;  %v513_v34 = vadd.f32 %v504_v28, %v499_v24 }
  0x4b   : > { %v506_v35 = vadd.f32 %v504_v28, %v492_v25  ;;  %v507_v36 = vadd.f32 %v504_v28, %v493_v26  ;;  %v508_v37 = vadd.f32 %v504_v28, %v494_v27  ;;  %v509_v38 = vadd.f32 %v504_v28, %v495_v29 }
  0x4c   : > { %v516_v39 = vpack.c.bf16 %v511_v32, %v510_v31  ;;  %v517_v40 = vpack.c.bf16 %v513_v34, %v512_v33 }
  0x4d   : > { %v514_v42 = vpack.c.bf16 %v507_v36, %v506_v35  ;;  %v515_v43 = vpack.c.bf16 %v509_v38, %v508_v37  ;;  %v1263_v36 = vld [vmem:[%s1757_s9] ss:$0 sm:$0xff] }
  0x4e   : > { %1337 = vmatprep.mubr.msk.bf16.mxu1 %vm423_vm0, %v516_v39 }
  0x4f   : > { %1338 = vmatmul.mubr.msk.bf16.vlgmr.msra.gmra.mrb[0].mxu1 %vm423_vm0, %v517_v40  ;;  %1333 = vmatprep.mubr.msk.bf16.mxu0 %vm423_vm0, %v514_v42 }
  0x50   : > { %1342 = vmatpush3.bf16.msra.mxu1 %v1560_v2  ;;  %1345 = vmatprep.mubr.msk.bf16.mxu1 %vm423_vm0, %v514_v42  ;;  %v1430_v2 = vld [vmem:[%s1756_s8 + $0x8] sm:$0xff]  }
  0x51   : > { %1343 = vmatprep.subr.bf16.mxu1 %v1428_v41  ;;  %1334 = vmatmul.mubr.msk.bf16.vlgmr.msra.gmra.mrb[0].mxu0 %vm423_vm0, %v515_v43 }
  0x52   : > { %1357 = vmatprep.mubr.msk.bf16.mxu0 %vm423_vm0, %v514_v42  ;;  %1354 = vmatpush3.bf16.msra.mxu0 %v1429_v44 }
  0x53   : > { %1355 = vmatprep.subr.bf16.mxu0 %v1430_v2 }
  0x54   : > { %1344 = vmatpush3.bf16.msra.mxu1 %v1428_v41 }
  0x56   : > { %1356 = vmatpush3.bf16.msra.mxu0 %v1430_v2 }
  0x57   : > { %1346 = vmatmul.mubr.msk.bf16.vlgmr.msra.gmra.mrb[4].mxu1 %vm423_vm0, %v515_v43 }
  0x58   : > { %1349 = vmatprep.mubr.msk.bf16.mxu1 %vm423_vm0, %v516_v39 }
  0x59   : > { %1358 = vmatmul.mubr.msk.bf16.vlgmr.msra.gmra.mrb[4].mxu0 %vm423_vm0, %v515_v43 }
  0x5a   : > { %1361 = vmatprep.mubr.msk.bf16.mxu0 %vm423_vm0, %v516_v39 }
  0x5f   : > { %1350 = vmatmul.mubr.msk.bf16.gmra.mrb[8].mxu1 %vm423_vm0, %v517_v40 }
  0x61   : > { %1362 = vmatmul.mubr.msk.bf16.gmra.mrb[8].mxu0 %vm423_vm0, %v517_v40 }
 0x122   : > { %v1339_v46 = vpop.f32.mrb[0].mxu1 }
 0x123   : > { %v603_v47 = vpop.f32.mrb[1].mxu1  ;;  %v612_v50 = vadd.f32 %v1339_v46, %v1249_v45 }
 0x124   : > { %v1340_v48 = vpop.f32.mrb[2].mxu1  ;;  %v1335_v49 = vpop.f32.mrb[0].mxu0  ;;  %v604_v55 = vadd.f32 %v1249_v45, %v603_v47 }
 0x125   : > { %v615_v51 = vadd.f32 %v1340_v48, %v1249_v45  ;;  %v606_v52 = vpop.f32.mrb[3].mxu1  ;;  %v596_v53 = vadd.f32 %v1335_v49, %v1249_v45  ;;  %v587_v54 = vpop.f32.mrb[1].mxu0 }
 0x126   : > { %v607_v56 = vadd.f32 %v1249_v45, %v606_v52  ;;  %v588_v57 = vadd.f32 %v1249_v45, %v587_v54  ;;  %v1336_v58 = vpop.f32.mrb[2].mxu0 }
 0x127   : > { %v810_v59 = vpack.c.bf16 %v615_v51, %v612_v50  ;;  %v599_v60 = vadd.f32 %v1336_v58, %v1249_v45  ;;  %v590_v61 = vpop.f32.mrb[3].mxu0 }
 0x128   : > { %v809_v62 = vpack.c.bf16 %v607_v56, %v604_v55  ;;  %v591_v63 = vadd.f32 %v1249_v45, %v590_v61 }
 0x129   : > { %v808_v0 = vpack.c.bf16 %v599_v60, %v596_v53 }
 0x12a   : > { %v1347_v1 = vpop.f32.mrb[4].mxu1  ;;  %v807_v9 = vpack.c.bf16 %v591_v63, %v588_v57 }
 0x12b   : > { %v675_v10 = vpop.f32.mrb[5].mxu1  ;;  %v684_v13 = vadd.f32 %v1347_v1, %v1256_v8 }
 0x12c   : > { %v1348_v11 = vpop.f32.mrb[6].mxu1  ;;  %1373 = vmatprep.mubr.msk.bf16.mxu1 %vm423_vm0, %v807_v9  ;;  %v676_v16 = vadd.f32 %v1256_v8, %v675_v10  ;;  %v1359_v37 = vpop.f32.mrb[4].mxu0 }
 0x12d   : > { %v687_v14 = vadd.f32 %v1348_v11, %v1256_v8  ;;  %v678_v15 = vpop.f32.mrb[7].mxu1  ;;  %v776_v38 = vadd.f32 %v1359_v37, %v1263_v36  ;;  %v767_v39 = vpop.f32.mrb[5].mxu0 }
 0x12e   : > { %v679_v17 = vadd.f32 %v1256_v8, %v678_v15  ;;  %v768_v40 = vadd.f32 %v1263_v36, %v767_v39  ;;  %v1360_v41 = vpop.f32.mrb[6].mxu0 }
 0x12f   : > { %v707_v18 = vpack.c.bf16 %v687_v14, %v684_v13  ;;  %v779_v42 = vadd.f32 %v1360_v41, %v1263_v36  ;;  %v770_v43 = vpop.f32.mrb[7].mxu0 }
 0x130   : > { %v706_v19 = vpack.c.bf16 %v679_v17, %v676_v16  ;;  %v771_v44 = vadd.f32 %v1263_v36, %v770_v43 }
 0x131   : > { %v827_v33 = vsel %vm423_vm0, %v707_v18, 0  ;;  %v799_v2 = vpack.c.bf16 %v779_v42, %v776_v38 }
 0x132   : > { %1413 = vmatprep.subr.msk.bf16.mxu1 %vm423_vm0, %v706_v19  ;;  %v824_v20 = vsel %vm423_vm0, %v706_v19, 0  ;;  %v1351_v21 = vpop.f32.mrb[8].mxu1  ;;  %v798_v45 = vpack.c.bf16 %v771_v44, %v768_v40 }
 0x133   : > { %1366 = vmatpush3.bf16.xpose.msra.mxu1 %v824_v20  ;;  %v700_v22 = vadd.f32 %v1351_v21, %v1256_v8  ;;  %v691_v24 = vpop.f32.mrb[9].mxu1 }
 0x134   : > { %1414 = vmatprep.subr.msk.bf16.mxu1 %vm423_vm0, %v707_v18  ;;  %v692_v25 = vadd.f32 %v1256_v8, %v691_v24  ;;  %v1352_v26 = vpop.f32.mrb[10].mxu1  ;;  %v1363_v46 = vpop.f32.mrb[8].mxu0  ;;  %1381 = vmatprep.subr.bf16.mxu0 %v798_v45 }
 0x135   : > { %v703_v27 = vadd.f32 %v1352_v26, %v1256_v8  ;;  %v694_v28 = vpop.f32.mrb[11].mxu1  ;;  %1382 = vmatpush3.bf16.msra.mxu0 %v798_v45  ;;  %v783_v63 = vpop.f32.mrb[9].mxu0  ;;  %v792_v1 = vadd.f32 %v1363_v46, %v1263_v36 }
 0x136   : > { %v695_v29 = vadd.f32 %v1256_v8, %v694_v28  ;;  %1383 = vmatprep.subr.bf16.mxu0 %v799_v2  ;;  %v784_v9 = vadd.f32 %v1263_v36, %v783_v63 }
 0x137   : > { %v709_v31 = vpack.c.bf16 %v703_v27, %v700_v22 }
 0x138   : > { %v708_v32 = vpack.c.bf16 %v695_v29, %v692_v25 }
 0x139   : > { %v833_v35 = vsel %vm423_vm0, %v709_v31, 0  ;;  %1384 = vmatpush3.bf16.msra.mxu0 %v799_v2 }
 0x13a   : > { %v830_v34 = vsel %vm423_vm0, %v708_v32, 0 }
 0x13b   : > { %1368 = vmatpush3.bf16.xpose.msra.mxu1 %v827_v33 }
 0x13c   : > { %1415 = vmatprep.subr.msk.bf16.mxu1 %vm423_vm0, %v708_v32 }
 0x143   : > { %1370 = vmatpush3.bf16.xpose.msra.mxu1 %v830_v34 }
 0x144   : > { %1416 = vmatprep.subr.msk.bf16.mxu1 %vm423_vm0, %v709_v31 }
 0x14b   : > { %1372 = vmatpush3.bf16.xpose.msra.mxu1 %v833_v35 }
 0x152   : > { %1374 = vmatmul.mubr.msk.bf16.vlgmr.msra.gmra.mrb[12].mxu1 %vm423_vm0, %v808_v0  ;;  %v1364_v0 = vpop.f32.mrb[10].mxu0 }
 0x153   : > { %1377 = vmatprep.mubr.msk.bf16.mxu1 %vm423_vm0, %v809_v62  ;;  %v786_v8 = vpop.f32.mrb[11].mxu0  ;;  %v795_v11 = vadd.f32 %v1364_v0, %v1263_v36 }
 0x154   : > { %v787_v10 = vadd.f32 %v1263_v36, %v786_v8 }
 0x155   : > { %v801_v14 = vpack.c.bf16 %v795_v11, %v792_v1 }
 0x156   : > { %v800_v13 = vpack.c.bf16 %v787_v10, %v784_v9 }
 0x158   : > { %1385 = vmatprep.subr.bf16.mxu0 %v800_v13 }
 0x159   : > { %1386 = vmatpush3.bf16.msra.mxu0 %v800_v13 }
 0x15a   : > { %1378 = vmatmul.mubr.msk.bf16.gmra.mrb[16].mxu1 %vm423_vm0, %v810_v59  ;;  %1387 = vmatprep.subr.bf16.mxu0 %v801_v14 }
 0x15d   : > { %1388 = vmatpush3.bf16.msra.mxu0 %v801_v14 }
 0x225   : > { %v1375_v47 = vpop.f32.mrb[12].mxu1 }
 0x226   : > { %v869_v48 = vpop.f32.mrb[13].mxu1  ;;  %v907_v49 = vsel %vm900_vm1, %v1375_v47, -inf }
 0x227   : > { %908 = vmax.xlane.f32.xlu1 %v907_v49  ;;  %v1376_v50 = vpop.f32.mrb[14].mxu1  ;;  %v901_v51 = vsel %vm900_vm1, %v869_v48, -inf }
 0x228   : > { %902 = vmax.xlane.f32.xlu0 %v901_v51  ;;  %v872_v52 = vpop.f32.mrb[15].mxu1  ;;  %v910_v53 = vsel %vm900_vm1, %v1376_v50, -inf }
 0x229   : > { %v904_v54 = vsel %vm900_vm1, %v872_v52, -inf }
 0x22b   : > { %911 = vmax.xlane.f32.xlu1 %v910_v53 }
 0x22c   : > { %905 = vmax.xlane.f32.xlu0 %v904_v54 }
 0x22d   : > { %v1379_v55 = vpop.f32.mrb[16].mxu1 }
 0x22e   : > { %v885_v56 = vpop.f32.mrb[17].mxu1  ;;  %v919_v61 = vsel %vm900_vm1, %v1379_v55, -inf }
 0x22f   : > { %v1380_v57 = vpop.f32.mrb[18].mxu1  ;;  %v913_v58 = vsel %vm900_vm1, %v885_v56, -inf }
 0x230   : > { %914 = vmax.xlane.f32.xlu0 %v913_v58  ;;  %v888_v59 = vpop.f32.mrb[19].mxu1  ;;  %v922_v62 = vsel %vm900_vm1, %v1380_v57, -inf }
 0x231   : > { %v916_v60 = vsel %vm900_vm1, %v888_v59, -inf }
 0x232   : > { %917 = vmax.xlane.f32.xlu1 %v916_v60  ;;  %v1431_v60 = vld [vmem:[%s1758_s10] sm:$0xff]  }
 0x233   : > { %1397 = vmatprep.subr.bf16.mxu0 %v1431_v60 }
 0x234   : > { %920 = vmax.xlane.f32.xlu0 %v919_v61  ;;  %v1432_v61 = vld [vmem:[%s1758_s10 + $0x8] sm:$0xff]  }
 0x236   : > { %923 = vmax.xlane.f32.xlu1 %v922_v62 }
 0x2b4   : > { %v909_v15 = vpop.xlane.xlu1 %908 }
 0x2b5   : > { %v927_v16 = vsub.f32 %v1375_v47, %v909_v15  ;;  %v903_v17 = vpop.xlane.xlu0 %902 }
 0x2b6   : > { %v925_v18 = vsub.f32 %v869_v48, %v903_v17 }
 0x2b7   : > { %v937_v19 = vmul.f32 1.442695, %v927_v16 }
 0x2b8   : > { %v933_v20 = vmul.f32 1.442695, %v925_v18  ;;  %v912_v21 = vpop.xlane.xlu1 %911 }
 0x2b9   : > { %v928_v22 = vsub.f32 %v1376_v50, %v912_v21  ;;  %v906_v24 = vpop.xlane.xlu0 %905 }
 0x2ba   : > { %1435 = vpow2.f32 %v933_v20  ;;  %v926_v25 = vsub.f32 %v872_v52, %v906_v24 }
 0x2bb   : > { %v939_v26 = vmul.f32 1.442695, %v928_v22  ;;  %1437 = vpow2.f32 %v937_v19 }
 0x2bc   : > { %v935_v27 = vmul.f32 1.442695, %v926_v25 }
 0x2bd   : > { %1439 = vpow2.f32 %v939_v26  ;;  %v915_v28 = vpop.xlane.xlu0 %914 }
 0x2be   : > { %1441 = vpow2.f32 %v935_v27  ;;  %v929_v29 = vsub.f32 %v885_v56, %v915_v28 }
 0x2bf   : > { %v918_v31 = vpop.xlane.xlu1 %917 }
 0x2c0   : > { %v941_v32 = vmul.f32 1.442695, %v929_v29  ;;  %v930_v33 = vsub.f32 %v888_v59, %v918_v31 }
 0x2c1   : > { %v921_v34 = vpop.xlane.xlu0 %920 }
 0x2c2   : > { %1443 = vpow2.f32 %v941_v32  ;;  %v943_v35 = vmul.f32 1.442695, %v930_v33  ;;  %v931_v36 = vsub.f32 %v1379_v55, %v921_v34 }
 0x2c3   : > { %v924_v37 = vpop.xlane.xlu1 %923 }
 0x2c4   : > { %v1436_v38 = vpop.eup %1435  ;;  %1445 = vpow2.f32 %v943_v35  ;;  %v945_v39 = vmul.f32 1.442695, %v931_v36  ;;  %v932_v40 = vsub.f32 %v1380_v57, %v924_v37 }
 0x2c5   : > { %v949_v41 = vsel %vm900_vm1, %v1436_v38, 0.0  ;;  %v1438_v42 = vpop.eup %1437 }
 0x2c6   : > { %1447 = vpow2.f32 %v945_v39  ;;  %v947_v43 = vmul.f32 1.442695, %v932_v40  ;;  %950 = vadd.xlane.f32.xlu0 %v949_v41  ;;  %v955_v46 = vsel %vm900_vm1, %v1438_v42, 0.0 }
 0x2c7   : > { %v1440_v44 = vpop.eup %1439 }
 0x2c8   : > { %v1442_v2 = vpop.eup %1441  ;;  %v974_v45 = vpack.c.bf16 %v1440_v44, %v1438_v42  ;;  %1449 = vpow2.f32 %v947_v43  ;;  %v958_v51 = vsel %vm900_vm1, %v1440_v44, 0.0  ;;  %v1278_v43 = vld [vmem:[%s1759_s11] ss:$0 sm:$0xff] }
 0x2c9   : > { %v952_v47 = vsel %vm900_vm1, %v1442_v2, 0.0  ;;  %v973_v48 = vpack.c.bf16 %v1442_v2, %v1436_v38 }
 0x2ca   : > { %956 = vadd.xlane.f32.xlu0 %v955_v46  ;;  %953 = vadd.xlane.f32.xlu1 %v952_v47 }
 0x2cb   : > { %1389 = vmatprep.mubr.msk.bf16.mxu0 %vm900_vm1, %v973_v48 }
 0x2cc   : > { %v1444_v49 = vpop.eup %1443  ;;  %1390 = vmatmul.mubr.msk.bf16.vlgmr.msra.gmra.mrb[12].mxu0 %vm900_vm1, %v974_v45 }
 0x2cd   : > { %v961_v50 = vsel %vm900_vm1, %v1444_v49, 0.0  ;;  %1398 = vmatpush3.bf16.msra.mxu0 %v1431_v60 }
 0x2ce   : > { %v1446_v52 = vpop.eup %1445  ;;  %962 = vadd.xlane.f32.xlu0 %v961_v50  ;;  %959 = vadd.xlane.f32.xlu1 %v958_v51 }
 0x2cf   : > { %v975_v53 = vpack.c.bf16 %v1446_v52, %v1444_v49  ;;  %v964_v56 = vsel %vm900_vm1, %v1446_v52, 0.0  ;;  %1399 = vmatprep.subr.bf16.mxu0 %v1432_v61 }
 0x2d0   : > { %v1448_v54 = vpop.eup %1447 }
 0x2d1   : > { %1393 = vmatprep.mubr.msk.bf16.mxu0 %vm900_vm1, %v975_v53  ;;  %v967_v55 = vsel %vm900_vm1, %v1448_v54, 0.0  ;;  %1400 = vmatpush3.bf16.msra.mxu0 %v1432_v61 }
 0x2d2   : > { %v1450_v57 = vpop.eup %1449  ;;  %968 = vadd.xlane.f32.xlu0 %v967_v55  ;;  %965 = vadd.xlane.f32.xlu1 %v964_v56 }
 0x2d3   : > { %v976_v58 = vpack.c.bf16 %v1450_v57, %v1448_v54  ;;  %v970_v59 = vsel %vm900_vm1, %v1450_v57, 0.0 }
 0x2d5   : > { %1394 = vmatmul.mubr.msk.bf16.gmra.mrb[16].mxu0 %vm900_vm1, %v976_v58 }
 0x2d6   : > { %971 = vadd.xlane.f32.xlu1 %v970_v59 }
 0x353   : > { %v951_v62 = vpop.xlane.xlu0 %950 }
 0x354   : > { %1451 = vrcp.f32 %v951_v62 }
 0x357   : > { %v954_v63 = vpop.xlane.xlu1 %953  ;;  %v957_v0 = vpop.xlane.xlu0 %956 }
 0x358   : > { %1453 = vrcp.f32 %v957_v0 }
 0x35b   : > { %v960_v1 = vpop.xlane.xlu1 %959  ;;  %v963_v8 = vpop.xlane.xlu0 %962 }
 0x35c   : > { %1455 = vrcp.f32 %v960_v1 }
 0x35d   : > { %1457 = vrcp.f32 %v954_v63 }
 0x35e   : > { %1459 = vrcp.f32 %v963_v8  ;;  %v1452_v13 = vpop.eup %1451 }
 0x35f   : > { %v966_v9 = vpop.xlane.xlu1 %965  ;;  %v969_v10 = vpop.xlane.xlu0 %968 }
 0x360   : > { %1461 = vrcp.f32 %v969_v10 }
 0x362   : > { %v1454_v15 = vpop.eup %1453 }
 0x363   : > { %v972_v11 = vpop.xlane.xlu1 %971 }
 0x364   : > { %1463 = vrcp.f32 %v972_v11 }
 0x365   : > { %1465 = vrcp.f32 %v966_v9 }
 0x366   : > { %v1456_v17 = vpop.eup %1455 }
 0x367   : > { %v1458_v19 = vpop.eup %1457 }
 0x368   : > { %v1460_v28 = vpop.eup %1459 }
 0x36a   : > { %v1462_v31 = vpop.eup %1461 }
 0x36e   : > { %v1464_v33 = vpop.eup %1463 }
 0x36f   : > { %v1466_v35 = vpop.eup %1465 }
 0x39f   : > { %v1391_v14 = vpop.f32.mrb[12].mxu0 }
 0x3a0   : > { %v1023_v16 = vpop.f32.mrb[13].mxu0  ;;  %v1064_v20 = vmul.f32 %v1454_v15, %v1391_v14 }
 0x3a1   : > { %v1392_v18 = vpop.f32.mrb[14].mxu0  ;;  %v1062_v24 = vmul.f32 %v1452_v13, %v1023_v16 }
 0x3a2   : > { %v1065_v21 = vmul.f32 %v1456_v17, %v1392_v18  ;;  %v1026_v22 = vpop.f32.mrb[15].mxu0 }
 0x3a3   : > { %v1063_v25 = vmul.f32 %v1458_v19, %v1026_v22 }
 0x3a4   : > { %v1071_v26 = vpack.c.bf16 %v1065_v21, %v1064_v20 }
 0x3a5   : > { %v1070_v27 = vpack.c.bf16 %v1063_v25, %v1062_v24 }
 0x3a7   : > { %1401 = vmatprep.mubr.msk.bf16.mxu0 %vm423_vm0, %v1070_v27 }
 0x3a8   : > { %v1395_v29 = vpop.f32.mrb[16].mxu0  ;;  %1402 = vmatmul.mubr.msk.bf16.vlgmr.msra.gmra.mrb[20].mxu0 %vm423_vm0, %v1071_v26 }
 0x3a9   : > { %v1039_v32 = vpop.f32.mrb[17].mxu0  ;;  %v1068_v36 = vmul.f32 %v1462_v31, %v1395_v29 }
 0x3aa   : > { %v1396_v34 = vpop.f32.mrb[18].mxu0  ;;  %v1066_v39 = vmul.f32 %v1460_v28, %v1039_v32 }
 0x3ab   : > { %v1069_v37 = vmul.f32 %v1464_v33, %v1396_v34  ;;  %v1042_v38 = vpop.f32.mrb[19].mxu0 }
 0x3ac   : > { %v1067_v40 = vmul.f32 %v1466_v35, %v1042_v38 }
 0x3ad   : > { %v1073_v41 = vpack.c.bf16 %v1069_v37, %v1068_v36 }
 0x3ae   : > { %v1072_v42 = vpack.c.bf16 %v1067_v40, %v1066_v39 }
 0x3b0   : > { %1405 = vmatprep.mubr.msk.bf16.mxu0 %vm423_vm0, %v1072_v42 }
 0x3b1   : > { %1406 = vmatmul.mubr.msk.bf16.gmra.mrb[24].mxu0 %vm423_vm0, %v1073_v41 }
 0x47b   : > { %v1403_v44 = vpop.f32.mrb[20].mxu0 }
 0x47c   : > { %v1147_v2 = vadd.f32 %v1403_v44, %v1278_v43  ;;  %v1138_v45 = vpop.f32.mrb[21].mxu0 }
 0x47d   : > { %v1139_v46 = vadd.f32 %v1278_v43, %v1138_v45  ;;  %v1404_v47 = vpop.f32.mrb[22].mxu0 }
 0x47e   : > { %v1171_v48 = vadd.f32 %v1147_v2, %v1576_v5  ;;  %v1150_v49 = vadd.f32 %v1404_v47, %v1278_v43  ;;  %v1141_v50 = vpop.f32.mrb[23].mxu0 }
 0x47f   : > { %v1169_v51 = vadd.f32 %v1139_v46, %v1570_v3  ;;  %v1142_v52 = vadd.f32 %v1278_v43, %v1141_v50 }
 0x480   : > { %1179 = vst.msk [vmem:[%s413_s23 + $0x10] sm:$0xff] %vm423_vm0, %v1171_v48  ;;  %v1172_v53 = vadd.f32 %v1150_v49, %v1579_v6 }
 0x481   : > { %1177 = vst.msk [vmem:[%s413_s23] sm:$0xff] %vm423_vm0, %v1169_v51  ;;  %v1170_v54 = vadd.f32 %v1142_v52, %v1573_v4 }
 0x482   : > { %1180 = vst.msk [vmem:[%s413_s23 + $0x18] sm:$0xff] %vm423_vm0, %v1172_v53 }
 0x483   : > { %1178 = vst.msk [vmem:[%s413_s23 + $0x8] sm:$0xff] %vm423_vm0, %v1170_v54 }
 0x484   : > { %v1407_v55 = vpop.f32.mrb[24].mxu0 }
 0x485   : > { %v1163_v56 = vadd.f32 %v1407_v55, %v1278_v43  ;;  %v1154_v5 = vpop.f32.mrb[25].mxu0 }
 0x486   : > { %v1155_v57 = vadd.f32 %v1278_v43, %v1154_v5  ;;  %v1408_v58 = vpop.f32.mrb[26].mxu0 }
 0x487   : > { %v1175_v3 = vadd.f32 %v1163_v56, %v1611_v23  ;;  %v1166_v59 = vadd.f32 %v1408_v58, %v1278_v43  ;;  %v1157_v60 = vpop.f32.mrb[27].mxu0 }
 0x488   : > { %v1173_v61 = vadd.f32 %v1155_v57, %v1582_v7  ;;  %v1158_v6 = vadd.f32 %v1278_v43, %v1157_v60 }
 0x489   : > { %1183 = vst.msk [vmem:[%s413_s23 + $0x30] sm:$0xff] %vm423_vm0, %v1175_v3  ;;  %v1176_v4 = vadd.f32 %v1166_v59, %v1620_v30 }
 0x48a   : > { %1181 = vst.msk [vmem:[%s413_s23 + $0x20] sm:$0xff] %vm423_vm0, %v1173_v61  ;;  %v1174_v62 = vadd.f32 %v1158_v6, %v1593_v12 }
 0x48b   : > { %1184 = vst.msk [vmem:[%s413_s23 + $0x38] sm:$0xff] %vm423_vm0, %v1176_v4 }
 0x48c   : > { %1182 = vst.msk [vmem:[%s413_s23 + $0x28] sm:$0xff] %vm423_vm0, %v1174_v62 }
 0x48d PF: > { %s22_s20 = sadd.s32 1, %s1473_s20  }
 0x48e   : > { %p19_p4 = scmp.ge.s32.totalorder %s22_s20, 4  }
 0x490   :  { %21 = sbr.rel (!%p19_p4) target bundleno = 1 (0x1), region = 98 }

</bundles_post_ra>
